<compile_context>
chip_gen: v6e
topology: v6e:2x2x1
jax: 0.10.0
libtpu: 0.0.40
codegen_flags: <defaults>
</compile_context>

<pallas_src>
import math
import functools

import jax
import jax.numpy as jnp
from jax import lax
from jax.experimental import pallas as pl
from jax.experimental.pallas import tpu as pltpu


# ----------------------------------------------------------------------------
# Per-generation VMEM budgets
# ----------------------------------------------------------------------------
@functools.lru_cache(maxsize=None)
def _vmem_budget():
    """Returns (block_budget_bytes, scoped_vmem_limit_bytes) for this chip."""
    vmem_bytes = 64 * 1024 * 1024                       # conservative fallback (v7x-sized)
    try:
        vmem_bytes = int(pltpu.get_tpu_info().vmem_capacity_bytes)
    except Exception:
        pass
    # ~96-100 MiB scoped on the 128 MiB parts (v5e/v6e), ~48 MiB on v7x.
    limit = min((vmem_bytes * 3) // 4, 100 * 1024 * 1024)
    budget = (limit * 3) // 4                           # headroom for intermediates / spills
    return budget, limit


def _divisor_tile(n, preferred, multiple=8):
    """Largest tile <= preferred that divides n and is a multiple of `multiple`."""
    if n <= preferred:
        return n
    t = (min(preferred, n) // multiple) * multiple
    while t >= multiple:
        if n % t == 0:
            return t
        t -= multiple
    # TODO(synk): no multiple-of-`multiple` divisor under the cap; fall back to the
    # full extent (single block). Fine for typical (8/128-aligned) model shapes.
    return n


def _col_tile(n, preferred):
    """Largest lane-aligned (multiple of 128) tile <= preferred dividing n, else n."""
    if n <= preferred:
        return n
    t = (min(preferred, n) // 128) * 128
    while t >= 128:
        if n % t == 0:
            return t
        t -= 128
    return n


# ----------------------------------------------------------------------------
# Kernel 1 & 3: row/column-tiled matmul + bias (QKV projection and out projection).
# Weights are pre-transposed in the wrapper; q-scaling folded into Wq/bq.
# ----------------------------------------------------------------------------
def _matmul_bias_kernel(x_ref, w_ref, b_ref, o_ref):
    o_ref[...] = (jnp.dot(x_ref[...], w_ref[...], preferred_element_type=jnp.float32)
                  + b_ref[...]).astype(o_ref.dtype)


def linear(x2d, w_t, b2d):
    """(N, K) @ (K, M) + (1, M) -> (N, M)."""
    n, k = x2d.shape
    m = w_t.shape[1]
    itemsize = jnp.dtype(x2d.dtype).itemsize
    budget, limit = _vmem_budget()

    # Column tile: keep the double-buffered weight block within ~half the budget
    # (guards the resident (K, M) weight against v7x's smaller VMEM).
    col_cap = max(128, (budget // 2) // max(2 * k * itemsize, 1))
    tn = _col_tile(m, col_cap)

    # Row tile: x + out blocks, double-buffered, in the remaining budget.
    rem = max(budget - 2 * k * tn * itemsize, 0)
    row_cap = max(8, rem // max(2 * (k + tn) * itemsize, 1))
    sub = max(8, 32 // itemsize)                       # 8 f32 / 16 bf16 / 32 int8 sublanes
    tm = _divisor_tile(n, min(2048, row_cap), sub)

    grid = (n // tm, m // tn)
    cost = pl.CostEstimate(
        flops=2 * n * k * m,
        transcendentals=0,
        bytes_accessed=itemsize * (n * k * (m // tn) + k * m * (n // tm) + n * m + m))

    return pl.pallas_call(
        _matmul_bias_kernel,
        out_shape=jax.ShapeDtypeStruct((n, m), x2d.dtype),
        grid=grid,
        in_specs=[pl.BlockSpec((tm, k), lambda i, j: (i, 0)),
                  pl.BlockSpec((k, tn), lambda i, j: (0, j)),
                  pl.BlockSpec((1, tn), lambda i, j: (0, j))],
        out_specs=pl.BlockSpec((tm, tn), lambda i, j: (i, j)),
        compiler_params=pltpu.CompilerParams(
            dimension_semantics=("parallel", "parallel"),
            vmem_limit_bytes=limit),
        cost_estimate=cost,
    )(x2d, w_t, b2d)


# ----------------------------------------------------------------------------
# Kernel 2: attention over all heads per grid step.
#   grid (B, T//tq); q block (1,1,tq,E), k/v blocks (1,1,T,E) of the (B,3,T,E) qkv
#   tensor (k/v indices constant over the q-tile axis -> fetched once per batch).
#   Softmax statistics in f32; head-mean accumulated in registers, written once.
# ----------------------------------------------------------------------------
def _attn_kernel(num_heads, head_dim, q_ref, k_ref, v_ref, ctx_ref, probs_ref):
    q = q_ref[0, 0]                                   # (tq, E), q-scaling pre-folded
    k = k_ref[0, 0]                                   # (T,  E)
    v = v_ref[0, 0]                                   # (T,  E)

    ctx_parts = []
    p_sum = jnp.zeros(probs_ref.shape[1:], jnp.float32)          # (tq, T)
    for h in range(num_heads):
        sl = slice(h * head_dim, (h + 1) * head_dim)
        s = lax.dot_general(q[:, sl], k[:, sl], (((1,), (1,)), ((), ())),
                            preferred_element_type=jnp.float32)  # (tq, T) f32
        mx = jnp.max(s, axis=-1, keepdims=True)
        e = jnp.exp(s - mx)
        p = e * pl.reciprocal(jnp.sum(e, axis=-1, keepdims=True), approx=True)
        p_sum = p_sum + p
        ctx_parts.append(jnp.dot(p.astype(v.dtype), v[:, sl],
                                 preferred_element_type=jnp.float32))

    ctx_ref[0] = jnp.concatenate(ctx_parts, axis=-1).astype(ctx_ref.dtype)
    probs_ref[0] = (p_sum * (1.0 / num_heads)).astype(probs_ref.dtype)


def attention(qkv, num_heads):
    """qkv: (B, 3, T, E), q pre-scaled. Returns ctx (B,T,E) and head-mean probs (B,T,T)."""
    B, three, T, E = qkv.shape
    assert three == 3
    D = E // num_heads
    dtype = qkv.dtype
    itemsize = jnp.dtype(dtype).itemsize
    budget, limit = _vmem_budget()

    # Per step: q/ctx blocks 2*2*tq*E, probs block 2*tq*T (activation dtype),
    # k/v blocks 2*2*T*E, live f32 softmax intermediates ~4*tq*T*4 bytes.
    denom = 4 * E * itemsize + 2 * T * itemsize + 16 * T
    sub = max(8, 32 // itemsize)
    cap = max(sub, (budget - 4 * T * E * itemsize) // max(denom, 1))
    tq = _divisor_tile(T, min(2048, cap), sub)
    grid = (B, T // tq)

    q_spec = pl.BlockSpec((1, 1, tq, E), lambda b, i: (b, 0, i, 0))
    k_spec = pl.BlockSpec((1, 1, T, E), lambda b, i: (b, 1, 0, 0))   # constant over i
    v_spec = pl.BlockSpec((1, 1, T, E), lambda b, i: (b, 2, 0, 0))   # constant over i
    ctx_spec = pl.BlockSpec((1, tq, E), lambda b, i: (b, i, 0))      # lane-dense (E)
    probs_spec = pl.BlockSpec((1, tq, T), lambda b, i: (b, i, 0))    # lane-dense (T)

    cost = pl.CostEstimate(
        flops=4 * B * T * T * E,
        transcendentals=B * num_heads * T * T,
        bytes_accessed=itemsize * (B * T * 3 * E + B * T * E + B * T * T))

    kernel = functools.partial(_attn_kernel, num_heads, D)
    return pl.pallas_call(
        kernel,
        out_shape=(jax.ShapeDtypeStruct((B, T, E), dtype),
                   jax.ShapeDtypeStruct((B, T, T), dtype)),
        grid=grid,
        in_specs=[q_spec, k_spec, v_spec],
        out_specs=(ctx_spec, probs_spec),
        compiler_params=pltpu.CompilerParams(
            dimension_semantics=("parallel", "parallel"),
            vmem_limit_bytes=limit),
        cost_estimate=cost,
    )(qkv, qkv, qkv)


# ----------------------------------------------------------------------------
# Full forward: mirrors LucaGPLMMultiheadAttention.forward (self-attention path)
# ----------------------------------------------------------------------------
def luca_mha_forward(x, params, num_heads):
    """x: (T, B, E). Returns (attn (T, B, E), attn_weights (B, T, T) head-mean)."""
    T, B, E = x.shape
    H = num_heads
    D = E // H
    scaling = D ** -0.5

    # Fused pre-transposed QKV weight, q-scaling folded in.
    w_qkv_t = jnp.concatenate(
        [params["wq"].T * scaling, params["wk"].T, params["wv"].T], axis=1)       # (E, 3E)
    b_qkv = jnp.concatenate(
        [params["bq"] * scaling, params["bk"], params["bv"]]).reshape(1, 3 * E)

    x2d = x.reshape(T * B, E)
    qkv2d = linear(x2d, w_qkv_t, b_qkv)                                           # (T*B, 3E)

    # (T*B, 3E) -> (B, 3, T, E): the only relayout before attention.
    qkv = jnp.transpose(qkv2d.reshape(T, B, 3, E), (1, 2, 0, 3))

    ctx, attn_weights = attention(qkv, H)                                         # (B,T,E), (B,T,T)

    ctx2d = jnp.transpose(ctx, (1, 0, 2)).reshape(T * B, E)                       # -> (T*B, E)
    out2d = linear(ctx2d, params["wo"].T, params["bo"].reshape(1, E))
    return out2d.reshape(T, B, E), attn_weights


# ----------------------------------------------------------------------------
# Pure-JAX reference mirroring the PyTorch module
# ----------------------------------------------------------------------------
def reference(x, params, num_heads):
    T, B, E = x.shape
    H = num_heads
    D = E // H
    scaling = D ** -0.5

    def lin(t, w, b):
        return jnp.einsum("tbe,fe->tbf", t, w) + b

    q = lin(x, params["wq"], params["bq"]) * scaling
    k = lin(x, params["wk"], params["bk"])
    v = lin(x, params["wv"], params["bv"])

    def split(t):
        return jnp.transpose(t.reshape(T, B, H, D), (1, 2, 0, 3))   # (B, H, T, D)

    qh, kh, vh = split(q), split(k), split(v)
    scores = jnp.einsum("bhtd,bhsd->bhts", qh, kh)
    probs = jax.nn.softmax(scores.astype(jnp.float32), axis=-1)
    ctx = jnp.einsum("bhts,bhsd->bhtd", probs, vh)
    ctx = jnp.transpose(ctx, (2, 0, 1, 3)).reshape(T, B, E)
    out = lin(ctx, params["wo"], params["bo"])
    attn_weights = jnp.mean(probs, axis=1)       # need_head_weights=False -> head mean
    return out, attn_weights


if __name__ == "__main__":
    T, B, E, H = 8, 2, 32, 4      # tgt_len, bsz, embed_dim, num_heads (head_dim = 8)

    key = jax.random.PRNGKey(0)
    ks = jax.random.split(key, 9)
    x = jax.random.normal(ks[0], (T, B, E), jnp.float32)

    wscale = 1.0 / math.sqrt(E)
    params = {
        "wq": jax.random.normal(ks[1], (E, E), jnp.float32) * wscale,
        "wk": jax.random.normal(ks[2], (E, E), jnp.float32) * wscale,
        "wv": jax.random.normal(ks[3], (E, E), jnp.float32) * wscale,
        "wo": jax.random.normal(ks[4], (E, E), jnp.float32) * wscale,
        "bq": jax.random.normal(ks[5], (E,), jnp.float32) * 0.01,
        "bk": jax.random.normal(ks[6], (E,), jnp.float32) * 0.01,
        "bv": jax.random.normal(ks[7], (E,), jnp.float32) * 0.01,
        "bo": jax.random.normal(ks[8], (E,), jnp.float32) * 0.01,
    }

    out, attn_weights = luca_mha_forward(x, params, num_heads=H)
    jax.block_until_ready((out, attn_weights))

    ref_out, ref_weights = reference(x, params, num_heads=H)
    assert out.shape == (T, B, E) and attn_weights.shape == (B, T, T)
    # Tolerances account for the EUP approximate reciprocal in the softmax denominator.
    assert jnp.allclose(attn_weights, ref_weights, atol=1e-3, rtol=1e-3), "attn_weights mismatch"
    assert jnp.allclose(out, ref_out, atol=2e-3, rtol=2e-3), "output mismatch"

    print("KERNEL_OK")
</pallas_src>

<mosaic_0001>
module attributes {stable_mosaic.version = 11 : i64} {
  func.func @_matmul_bias_kernel(%arg0: i32, %arg1: i32, %arg2: memref<16x32xf32, #tpu.memory_space<vmem>>, %arg3: memref<32x96xf32, #tpu.memory_space<vmem>>, %arg4: memref<1x96xf32, #tpu.memory_space<vmem>>, %arg5: memref<16x96xf32, #tpu.memory_space<vmem>>) attributes {dimension_semantics = [#tpu.dimension_semantics<parallel>, #tpu.dimension_semantics<parallel>], iteration_bounds = array<i64: 1, 1>, scalar_prefetch = 0 : i64, scratch_operands = 0 : i64, tpu.core_type = #tpu.core_type<tc>, window_params = [{transform_indices = @transform_0, window_bounds = array<i64: 16, 32>}, {transform_indices = @transform_1, window_bounds = array<i64: 32, 96>}, {transform_indices = @transform_2, window_bounds = array<i64: 1, 96>}, {transform_indices = @transform_3, window_bounds = array<i64: 16, 96>}]} {
    %c0 = arith.constant 0 : index
    %c0_0 = arith.constant 0 : index
    %0 = vector.load %arg2[%c0, %c0_0] : memref<16x32xf32, #tpu.memory_space<vmem>>, vector<16x32xf32>
    %c0_1 = arith.constant 0 : index
    %c0_2 = arith.constant 0 : index
    %1 = vector.load %arg3[%c0_1, %c0_2] : memref<32x96xf32, #tpu.memory_space<vmem>>, vector<32x96xf32>
    %cst = arith.constant dense<0.000000e+00> : vector<16x96xf32>
    %2 = tpu.matmul %0, %1, %cst {dimension_numbers = #tpu.dot_dimension_numbers<[1], [0], [0], [1], [0, 0, 1, 1], [], []>} : vector<16x32xf32>, vector<32x96xf32>, vector<16x96xf32> -> vector<16x96xf32>
    %c0_3 = arith.constant 0 : index
    %c0_4 = arith.constant 0 : index
    %3 = vector.load %arg4[%c0_3, %c0_4] : memref<1x96xf32, #tpu.memory_space<vmem>>, vector<1x96xf32>
    %4 = vector.broadcast %3 : vector<1x96xf32> to vector<16x96xf32>
    %5 = arith.addf %2, %4 : vector<16x96xf32>
    %c0_5 = arith.constant 0 : index
    %c0_6 = arith.constant 0 : index
    %6 = vector.load %arg5[%c0_5, %c0_6] : memref<16x96xf32, #tpu.memory_space<vmem>>, vector<16x96xf32>
    tpu.vector_store %arg5[%c0_5, %c0_6], %5 {strides = array<i32>} : memref<16x96xf32, #tpu.memory_space<vmem>>, vector<16x96xf32>,
    return
  }
  func.func @transform_0(%arg0: i32, %arg1: i32) -> (i32, i32) {
    %c0_i32 = arith.constant 0 : i32
    %c0_i32_0 = arith.constant 0 : i32
    return %arg0, %c0_i32 : i32, i32
  }
  func.func @transform_1(%arg0: i32, %arg1: i32) -> (i32, i32) {
    %c0_i32 = arith.constant 0 : i32
    %c0_i32_0 = arith.constant 0 : i32
    return %c0_i32, %arg1 : i32, i32
  }
  func.func @transform_2(%arg0: i32, %arg1: i32) -> (i32, i32) {
    %c0_i32 = arith.constant 0 : i32
    %c0_i32_0 = arith.constant 0 : i32
    return %c0_i32, %arg1 : i32, i32
  }
  func.func @transform_3(%arg0: i32, %arg1: i32) -> (i32, i32) {
    %c0_i32 = arith.constant 0 : i32
    return %arg0, %arg1 : i32, i32
  }
}

</mosaic_0001>

<bundles_post_ra>
// kernel: tpu_custom_call.1
= control target key start
LH: loop header
LB: loop body
LE: loop exit
PB: predicated region body
PF: predicated region fallthrough
CT: control target
= control target key end

     0   :  { %8 = vsyncpa [#allocation3], 0  ;;  %s298_s0 = inlined_call_operand.hbm [shape: f32[16,32], index: 0, kind: input, shape index: {}]   ;;  %s299_s1 = inlined_call_operand.hbm [shape: f32[32,96], index: 1, kind: input, shape index: {}]   ;;  %s300_s2 = inlined_call_operand.vmem [shape: f32[1,96], index: 2, kind: input, shape index: {}]   ;;  %s301_s3 = inlined_call_operand.hbm [shape: f32[16,96], index: 3, kind: output, shape index: {}]  }
   0x1   :  { %9 = vsyncpa [#allocation6], 0 }
   0x2   :  { %10 = vsyncpa [#allocation4], 0  ;;  %s250_s12 = smov [#allocation2]  }
   0x3   :  { %s16_s13 = sshll.u32 %s250_s12, 4  ;;  %s17_s13 = int_to_ptr.vmem [resolvable:$true] %s16_s13 }
   0x4   :  { %s192_s14 = scalar_lea.vmem %s17_s13, 256  ;;  %p197_p1 = scmp.lt.s32.totalorder %s17_s13, %s17_s13 }
   0x5   :  { %p193_p0 = scmp.ne.s32.totalorder %s17_s13, %s192_s14  ;;  %p198_p2 = scmp.lt.s32.totalorder %s192_s14, %s192_s14 }
   0x7   :  { %p199_p3 = por %p198_p2, %p197_p1 }
   0x9   :  { %p200_p4 = pnand %p199_p3, %p193_p0 }
   0xb   :  { %203 = shalt.err (!%p200_p4)
}
   0xc   :  { %s251_s15 = smov 128   ;;  %s252_s16 = smov 8  }
   0xd   :  { %22 = dma.hbm_to_vmem [thread:$0]  %s298_s0, 256, %s17_s13, [#allocation3], %s251_s15, %s251_s15, %s252_s16  }
   0xe   :  { %s253_s19 = smov [#allocation5]  }
   0xf   :  { %s28_s20 = sshll.u32 %s253_s19, 4  ;;  %s29_s20 = int_to_ptr.vmem [resolvable:$true] %s28_s20 }
  0x10   :  { %s212_s21 = scalar_lea.vmem %s29_s20, 512  ;;  %p217_p6 = scmp.lt.s32.totalorder %s29_s20, %s29_s20 }
  0x11   :  { %p213_p5 = scmp.ne.s32.totalorder %s29_s20, %s212_s21  ;;  %p218_p7 = scmp.lt.s32.totalorder %s212_s21, %s212_s21 }
  0x13   :  { %p219_p8 = por %p218_p7, %p217_p6 }
  0x15   :  { %p220_p9 = pnand %p219_p8, %p213_p5 }
  0x17   :  { %223 = shalt.err (!%p220_p9)
}
  0x18   :  { %34 = dma.hbm_to_vmem [thread:$0]  %s299_s1, 512, %s29_s20, [#allocation6], %s251_s15, %s251_s15, %s252_s16  }
  0x19   :  { %244 = dma.done.wait [#allocation3], 256  }
  0x1a   :  { %245 = vsyncadd [#allocation3], 4294967040 }
  0x1b   :  { %246 = dma.done.wait [#allocation6], 512  }
  0x1c   :  { %247 = vsyncadd [#allocation6], 4294966784  ;;  %vm56_vm0 = vcmask 261120   ;;  %v48_v0 = vld [vmem:[#allocation5 + $0x18] sm:$0xff]  ;;  %v47_v1 = vld [vmem:[#allocation5 + $0x10] sm:$0xff]  ;;  %vm138_vm1 = vcmask 785408  }
  0x1d   :  { %168 = vmatprep.subr.mxu0 %v48_v0  ;;  %v43_v2 = vld [vmem:[#allocation2] sm:$0xff]  ;;  %v46_v3 = vld [vmem:[#allocation5 + $0x8] sm:$0xff]  ;;  %v45_v4 = vld [vmem:[#allocation5] sm:$0xff]  ;;  %s254_s24 = smov [#allocation7]  }
  0x1e   :  { %169 = vmatpush3.msra.mxu0 %v48_v0  ;;  %176 = vmatprep.mubr.msk.f32.mxu0 %vm56_vm0, %v43_v2  ;;  %v44_v5 = vld [vmem:[#allocation2 + $0x8] sm:$0xff]  ;;  %v159_v6 = vld [vmem:[%s300_s2] ss:$0 sm:$0xff]  ;;  %s146_s25 = sshll.u32 %s254_s24, 4  ;;  %s147_s25 = int_to_ptr.vmem [resolvable:$true] %s146_s25 }
  0x1f   :  { %170 = vmatprep.subr.mxu0 %v47_v1  ;;  %s224_s26 = scalar_lea.vmem %s147_s25, 256  ;;  %p229_p11 = scmp.lt.s32.totalorder %s147_s25, %s147_s25 }
  0x20   :  { %171 = vmatpush3.msra.mxu0 %v47_v1  ;;  %p225_p10 = scmp.ne.s32.totalorder %s147_s25, %s224_s26  ;;  %p230_p12 = scmp.lt.s32.totalorder %s224_s26, %s224_s26 }
  0x21   :  { %172 = vmatprep.subr.mxu0 %v46_v3 }
  0x22   :  { %173 = vmatpush3.msra.mxu0 %v46_v3  ;;  %p231_p13 = por %p230_p12, %p229_p11 }
  0x23   :  { %174 = vmatprep.subr.mxu0 %v45_v4 }
  0x24   :  { %175 = vmatpush3.msra.mxu0 %v45_v4  ;;  %p232_p0 = pnand %p231_p13, %p225_p10 }
  0x25   :  { %177 = vmatmul.mubr.msk.f32.vlgmr.msra.gmra.mxu0 %vm56_vm0, %v44_v5 }
  0xe5   :  { %v178_v7 = vpop.f32.mrf.mxu0 }
  0xe6   :  { %v135_v8 = vadd.f32 %v178_v7, %v159_v6 }
  0xe7   :  { %v129_v9 = vpop.f32.mrf.mxu0 }
  0xe8   :  { %v130_v10 = vadd.f32 %v159_v6, %v129_v9  ;;  %140 = vst.msk [vmem:[#allocation7 + $0x8] sm:$0xff] %vm138_vm1, %v135_v8 }
  0xea   :  { %139 = vst.msk [vmem:[#allocation7] sm:$0xff] %vm138_vm1, %v130_v10 }
  0xeb   :  { %235 = shalt.err (!%p232_p0)
}
  0xec   :  { %152 = dma.vmem_to_hbm [thread:$0]  %s147_s25, 256, %s301_s3, [#allocation4], %s251_s15, %s251_s15, %s252_s16  }
  0xed   :  { %248 = dma.done.wait [#allocation4], 256  }
  0xee   :  { %249 = vsyncadd [#allocation4], 4294967040 }
  0xef   :  { %156 = vsyncpa [#allocation3], 1 }
  0xf0   :  { %157 = vsyncpa [#allocation6], 1 }
  0xf1   :  { %158 = vsyncpa [#allocation4], 1 }

</bundles_post_ra>
